<compile_context>
chip_gen: v5e
topology: v5e:2x2
jax: 0.10.0
libtpu: 0.0.40
codegen_flags: <defaults>
</compile_context>

<pallas_src>
import functools

import jax
import jax.numpy as jnp
from jax.experimental import pallas as pl
from jax.experimental.pallas import tpu as pltpu


def _tree_max(parts):
    """Balanced pairwise fold with jnp.maximum (keeps VPU dep chains short)."""
    while len(parts) > 1:
        nxt = [jnp.maximum(a, b) for a, b in zip(parts[0::2], parts[1::2])]
        if len(parts) % 2:
            nxt.append(parts[-1])
        parts = nxt
    return parts[0]


def _token_max_kernel(x_ref, o_ref, acc_ref, *, start, end, tok_base, tile_t,
                      sub, mask_val, needs_mask):
    # x_ref:   (tile_b, tile_t, tile_h) block of X
    # o_ref:   (tile_b, tile_h) output block, resident across the token grid axis
    # acc_ref: (tile_b, sub, tile_h) VMEM accumulator (running elementwise max)
    kt = pl.program_id(2)
    nt = pl.num_programs(2)

    @pl.when(kt == 0)
    def _init():
        acc_ref[...] = jnp.full(acc_ref.shape, mask_val, acc_ref.dtype)

    x = x_ref[...]
    if needs_mask:
        # Global token index of each row in this block; mask rows outside
        # [start, end) (covers the ragged leading tile, trailing tile and any
        # padded out-of-bounds rows of the last tile).
        tok0 = (tok_base + kt) * tile_t
        ids = tok0 + jax.lax.broadcasted_iota(jnp.int32, (1, tile_t, 1), 1)
        valid = (ids >= start) & (ids < end)
        x = jnp.where(valid, x, jnp.asarray(mask_val, x.dtype))

    # Fold the token tile into `sub` sublanes with elementwise maxima (VPU),
    # deferring the cross-sublane reduce to the final step.  Slices are aligned
    # to the dtype's packed-sublane tile (sub == packing).
    nch, rem = divmod(tile_t, sub)
    parts = [acc_ref[...]]
    for i in range(nch):
        parts.append(x[:, i * sub:(i + 1) * sub, :])
    if rem:
        parts.append(jnp.max(x[:, nch * sub:, :], axis=1, keepdims=True))
    acc_ref[...] = _tree_max(parts)

    @pl.when(kt == nt - 1)
    def _finalize():
        # Single cross-sublane (XLU) reduce per output block.
        o_ref[...] = jnp.max(acc_ref[...], axis=1).astype(o_ref.dtype)


def _round_up(n: int, m: int) -> int:
    return ((n + m - 1) // m) * m


@functools.partial(jax.jit, static_argnames=("start_idx", "end_idx", "block_bytes"))
def token_max_pooling(x, start_idx: int = 0, end_idx=None,
                      block_bytes: int = 4 * 1024 * 1024):
    """Pallas implementation of TokenMaxPooling.forward.

    x: [B, T, H]; returns [B, H] = max over tokens start_idx:end_idx.
    """
    B, T, H = x.shape
    dtype = x.dtype
    itemsize = dtype.itemsize

    # Exact Python slice semantics (None / negative / clamping), like torch.
    start, end, _ = slice(start_idx, end_idx).indices(T)
    assert end > start, "empty token range"

    if jnp.issubdtype(dtype, jnp.floating):
        mask_val = float("-inf")
    else:
        mask_val = int(jnp.iinfo(dtype).min)

    # Sublane packing for the dtype (f32: 8, bf16: 16, int8/fp8: 32).
    packing = 8 * max(1, 4 // itemsize)

    # ---- tile selection (VMEM-budgeted, alignment-respecting) ----
    tile_b = B if B <= 8 else 8                     # ==B (<=8) or multiple of 8

    # Prefer full H (no re-reading of token rows across H tiles) whenever a
    # minimal token tile still fits the block budget; otherwise 1024-lane tiles.
    if H <= 1024 or tile_b * packing * H * itemsize <= block_bytes:
        tile_h = H
    else:
        tile_h = 1024                               # multiple of 128

    tt = block_bytes // max(1, tile_b * tile_h * itemsize)
    tt = min(tt, 2048)                              # bound in-kernel unroll
    tt = max(packing, (tt // packing) * packing)    # sublane-aligned
    tt = min(tt, _round_up(end - start, packing), _round_up(T, packing))
    tile_t = T if tt >= T else tt                   # full dim waives alignment

    k0 = start // tile_t                            # first token-tile index
    t_hi = pl.cdiv(end, tile_t)                     # one past last token-tile
    nt = t_hi - k0
    nb = pl.cdiv(B, tile_b)
    nh = pl.cdiv(H, tile_h)

    needs_mask = (start % tile_t != 0) or (end % tile_t != 0)

    kernel = functools.partial(
        _token_max_kernel, start=start, end=end, tok_base=k0, tile_t=tile_t,
        sub=packing, mask_val=mask_val, needs_mask=needs_mask)

    cost = pl.CostEstimate(
        flops=B * (end - start) * H,
        transcendentals=0,
        bytes_accessed=(nb * tile_b) * (nh * tile_h) * (nt * tile_t) * itemsize
        + B * H * itemsize)

    out = pl.pallas_call(
        kernel,
        out_shape=jax.ShapeDtypeStruct((B, H), dtype),
        grid=(nb, nh, nt),
        in_specs=[pl.BlockSpec((tile_b, tile_t, tile_h),
                               lambda b, h, t: (b, t + k0, h))],
        out_specs=pl.BlockSpec((tile_b, tile_h), lambda b, h, t: (b, h)),
        scratch_shapes=[pltpu.VMEM((tile_b, packing, tile_h), dtype)],
        compiler_params=pltpu.CompilerParams(
            dimension_semantics=("parallel", "parallel", "arbitrary")),
        cost_estimate=cost,
    )(x)
    return out


if __name__ == "__main__":
    key = jax.random.PRNGKey(0)

    # Small shapes consistent with the module: batch=2, seq=8, hidden=32.
    B, T, H = 2, 8, 32
    x = jax.random.normal(key, (B, T, H), dtype=jnp.float32)

    # end_idx=None branch (pool over tokens [1, T)).
    y = jax.block_until_ready(token_max_pooling(x, start_idx=1, end_idx=None))
    y_ref = jnp.max(x[:, 1:, :], axis=1)
    assert y.shape == (B, H) and y.dtype == x.dtype
    assert jnp.allclose(y, y_ref), "mismatch vs reference (None end_idx)"

    # Explicit end_idx branch.
    y2 = jax.block_until_ready(token_max_pooling(x, start_idx=2, end_idx=6))
    y2_ref = jnp.max(x[:, 2:6, :], axis=1)
    assert jnp.allclose(y2, y2_ref), "mismatch vs reference (end_idx branch)"

    # Multi-tile token grid + ragged masking + non-128 hidden dim + k0 offset,
    # exercised with a tiny block budget so several token tiles are used.
    key2 = jax.random.PRNGKey(1)
    x2 = jax.random.normal(key2, (3, 40, 160), dtype=jnp.float32)
    y3 = jax.block_until_ready(
        token_max_pooling(x2, start_idx=5, end_idx=37, block_bytes=32768))
    assert jnp.allclose(y3, jnp.max(x2[:, 5:37, :], axis=1)), \
        "mismatch vs reference (multi-tile masked)"
    y4 = jax.block_until_ready(
        token_max_pooling(x2, start_idx=-10, end_idx=None, block_bytes=32768))
    assert jnp.allclose(y4, jnp.max(x2[:, -10:, :], axis=1)), \
        "mismatch vs reference (negative start_idx)"

    # bf16 path: exercises packed-sublane (packing=16) accumulator + tail fold.
    key3 = jax.random.PRNGKey(2)
    x3 = jax.random.normal(key3, (2, 19, 64), dtype=jnp.bfloat16)
    y5 = jax.block_until_ready(token_max_pooling(x3, start_idx=3, end_idx=None))
    assert jnp.array_equal(y5, jnp.max(x3[:, 3:, :], axis=1)), \
        "mismatch vs reference (bf16)"

    print("KERNEL_OK")
</pallas_src>

<mosaic_0001>
module attributes {stable_mosaic.version = 11 : i64} {
  func.func @_token_max_kernel(%arg0: i32, %arg1: i32, %arg2: i32, %arg3: memref<2x8x32xf32, #tpu.memory_space<vmem>>, %arg4: memref<2x32xf32, #tpu.memory_space<vmem>>, %arg5: memref<2x8x32xf32, #tpu.memory_space<vmem>>) attributes {dimension_semantics = [#tpu.dimension_semantics<parallel>, #tpu.dimension_semantics<parallel>, #tpu.dimension_semantics<arbitrary>], iteration_bounds = array<i64: 1, 1, 1>, scalar_prefetch = 0 : i64, scratch_operands = 1 : i64, tpu.core_type = #tpu.core_type<tc>, window_params = [{transform_indices = @transform_0, window_bounds = array<i64: 2, 8, 32>}, {transform_indices = @transform_1, window_bounds = array<i64: 2, 32>}]} {
    %c0_i32 = arith.constant 0 : i32
    %0 = arith.cmpi eq, %arg2, %c0_i32 : i32
    %1 = arith.extui %0 : i1 to i32
    %c0_i32_0 = arith.constant 0 : i32
    %2 = arith.cmpi ne, %1, %c0_i32_0 : i32
    scf.if %2 {
      %cst_13 = arith.constant 0xFF800000 : f32
      %24 = vector.broadcast %cst_13 : f32 to vector<2x8x32xf32>
      %c0_14 = arith.constant 0 : index
      %c0_15 = arith.constant 0 : index
      %c0_16 = arith.constant 0 : index
      %25 = vector.load %arg5[%c0_14, %c0_15, %c0_16] : memref<2x8x32xf32, #tpu.memory_space<vmem>>, vector<2x8x32xf32>
      tpu.vector_store %arg5[%c0_14, %c0_15, %c0_16], %24 {strides = array<i32>} : memref<2x8x32xf32, #tpu.memory_space<vmem>>, vector<2x8x32xf32>,
    } else {
    }
    %c0 = arith.constant 0 : index
    %c0_1 = arith.constant 0 : index
    %c0_2 = arith.constant 0 : index
    %3 = vector.load %arg3[%c0, %c0_1, %c0_2] : memref<2x8x32xf32, #tpu.memory_space<vmem>>, vector<2x8x32xf32>
    %c0_i32_3 = arith.constant 0 : i32
    %4 = arith.addi %c0_i32_3, %arg2 : i32
    %c8_i32 = arith.constant 8 : i32
    %5 = arith.muli %4, %c8_i32 : i32
    %6 = tpu.iota {dimensions = array<i32: 1>} : vector<1x8x1xi32>
    %7 = vector.broadcast %5 : i32 to vector<1x8x1xi32>
    %8 = arith.addi %7, %6 : vector<1x8x1xi32>
    %c1_i32 = arith.constant 1 : i32
    %9 = vector.broadcast %c1_i32 : i32 to vector<1x8x1xi32>
    %10 = arith.cmpi sge, %8, %9 : vector<1x8x1xi32>
    %c8_i32_4 = arith.constant 8 : i32
    %11 = vector.broadcast %c8_i32_4 : i32 to vector<1x8x1xi32>
    %12 = arith.cmpi slt, %8, %11 : vector<1x8x1xi32>
    %13 = arith.andi %10, %12 : vector<1x8x1xi1>
    %cst = arith.constant 0xFF800000 : f32
    %14 = vector.shape_cast %13 : vector<1x8x1xi1> to vector<1x8x1xi1>
    %15 = vector.broadcast %14 : vector<1x8x1xi1> to vector<2x8x32xi1>
    %16 = vector.broadcast %cst : f32 to vector<2x8x32xf32>
    %17 = arith.select %15, %3, %16 : vector<2x8x32xi1>, vector<2x8x32xf32>
    %c0_5 = arith.constant 0 : index
    %c0_6 = arith.constant 0 : index
    %c0_7 = arith.constant 0 : index
    %18 = vector.load %arg5[%c0_5, %c0_6, %c0_7] : memref<2x8x32xf32, #tpu.memory_space<vmem>>, vector<2x8x32xf32>
    %19 = arith.maximumf %18, %17 : vector<2x8x32xf32>
    %c0_8 = arith.constant 0 : index
    %c0_9 = arith.constant 0 : index
    %c0_10 = arith.constant 0 : index
    %20 = vector.load %arg5[%c0_8, %c0_9, %c0_10] : memref<2x8x32xf32, #tpu.memory_space<vmem>>, vector<2x8x32xf32>
    tpu.vector_store %arg5[%c0_8, %c0_9, %c0_10], %19 {strides = array<i32>} : memref<2x8x32xf32, #tpu.memory_space<vmem>>, vector<2x8x32xf32>,
    %c0_i32_11 = arith.constant 0 : i32
    %21 = arith.cmpi eq, %arg2, %c0_i32_11 : i32
    %22 = arith.extui %21 : i1 to i32
    %c0_i32_12 = arith.constant 0 : i32
    %23 = arith.cmpi ne, %22, %c0_i32_12 : i32
    scf.if %23 {
      %c0_13 = arith.constant 0 : index
      %c0_14 = arith.constant 0 : index
      %c0_15 = arith.constant 0 : index
      %24 = vector.load %arg5[%c0_13, %c0_14, %c0_15] : memref<2x8x32xf32, #tpu.memory_space<vmem>>, vector<2x8x32xf32>
      %cst_16 = arith.constant dense<0xFF800000> : vector<2x32xf32>
      %25 = vector.multi_reduction <maximumf>, %24, %cst_16 [1] : vector<2x8x32xf32> to vector<2x32xf32>
      %c0_17 = arith.constant 0 : index
      %c0_18 = arith.constant 0 : index
      %26 = vector.load %arg4[%c0_17, %c0_18] : memref<2x32xf32, #tpu.memory_space<vmem>>, vector<2x32xf32>
      tpu.vector_store %arg4[%c0_17, %c0_18], %25 {strides = array<i32>} : memref<2x32xf32, #tpu.memory_space<vmem>>, vector<2x32xf32>,
    } else {
    }
    return
  }
  func.func @transform_0(%arg0: i32, %arg1: i32, %arg2: i32) -> (i32, i32, i32) {
    %c0_i32 = arith.constant 0 : i32
    %0 = arith.addi %arg2, %c0_i32 : i32
    %c0_i32_0 = arith.constant 0 : i32
    return %arg0, %0, %arg1 : i32, i32, i32
  }
  func.func @transform_1(%arg0: i32, %arg1: i32, %arg2: i32) -> (i32, i32) {
    %c0_i32 = arith.constant 0 : i32
    return %arg0, %arg1 : i32, i32
  }
}

</mosaic_0001>

<bundles_post_ra>
// kernel: token_max_pooling.1
= control target key start
LH: loop header
LB: loop body
LE: loop exit
PB: predicated region body
PF: predicated region fallthrough
CT: control target
= control target key end

     0   :  { %6 = vsyncpa [#allocation4], 0  ;;  %s180_s0 = inlined_call_operand.hbm [shape: f32[2,8,32], index: 0, kind: input, shape index: {}]   ;;  %s181_s1 = inlined_call_operand.hbm [shape: f32[2,32], index: 1, kind: output, shape index: {}]  }
   0x1   :  { %7 = vsyncpa [#allocation5], 0  ;;  %s12_s8 = sshll.u32 %s180_s0, 4  ;;  %s153_s9 = smov [#allocation3]   ;;  %s13_s8 = int_to_ptr.hbm [resolvable:$true] %s12_s8 }
   0x2   :  { %s14_s10 = sshll.u32 %s153_s9, 4  ;;  %s154_s11 = smov 128   ;;  %s15_s10 = int_to_ptr.vmem [resolvable:$true] %s14_s10 }
   0x3   :  { %s155_s12 = smov 8  }
   0x4   :  { %20 = dma.hbm_to_vmem [thread:$0]  %s13_s8, 256, %s15_s10, [#allocation4], %s154_s11, %s154_s11, %s155_s12  }
   0x5   :  { %149 = dma.done.wait [#allocation4], 256  }
   0x6   :  { %150 = vsyncadd [#allocation4], 4294967040  ;;  %vm29_vm0 = vcmask 261120   ;;  %v35_v0 = vlaneseq  ;;  %v156_v1 = vmov -inf   ;;  %v32_v3 = vld [vmem:[#allocation3] sm:$0xff]  ;;  %v33_v4 = vld [vmem:[#allocation3 + $0x8] sm:$0xff] }
   0x7   :  { %30 = vst.msk [vmem:[#allocation2] sm:$0xff] %vm29_vm0, %v156_v1  ;;  %s157_s0 = smov [#allocation6]   ;;  %s86_s16 = sshll.u32 %s181_s1, 4  ;;  %vm74_vm2 = vcmask 1041409   ;;  %vm77_vm3 = vcmask 254976   ;;  %s87_s16 = int_to_ptr.hbm [resolvable:$true] %s86_s16 }
   0x8   :  { %31 = vst.msk [vmem:[#allocation2 + $0x8] sm:$0xff] %vm29_vm0, %v156_v1  ;;  %v36_v2 = vshrl.u32 %v35_v0, 7  ;;  %s84_s13 = sshll.u32 %s157_s0, 4  ;;  %s85_s13 = int_to_ptr.vmem [resolvable:$true] %s84_s13 }
   0xa   :  { %vm39_vm1 = vcmp.ge.s32.totalorder %v36_v2, 1 }
   0xb   :  { %v44_v5 = vsel %vm39_vm1, %v32_v3, -inf  ;;  %v45_v7 = vsel %vm39_vm1, %v33_v4, -inf }
   0xe   :  { %v46_v6 = vld [vmem:[#allocation2] sm:$0xff] }
   0xf   :  { %v48_v8 = vmax.f32 %v46_v6, %v44_v5  ;;  %v47_v9 = vld [vmem:[#allocation2 + $0x8] sm:$0xff] }
  0x10   :  { %v49_v10 = vmax.f32 %v47_v9, %v45_v7 }
  0x11   :  { %51 = vst.msk [vmem:[#allocation2] sm:$0xff] %vm29_vm0, %v48_v8 }
  0x12   :  { %52 = vst.msk [vmem:[#allocation2 + $0x8] sm:$0xff] %vm29_vm0, %v49_v10 }
  0x18   :  { %v56_v11 = vld [vmem:[#allocation2] sm:$0xff] }
  0x19   :  { %v57_v12 = vld [vmem:[#allocation2 + $0x8] sm:$0xff]  ;;  %v58_v13 = vsel %vm29_vm0, %v56_v11, -inf }
  0x1a   :  { %v59_v14 = vrot.slane %v58_v13, 4  ;;  %v65_v15 = vsel %vm29_vm0, %v57_v12, -inf }
  0x1b   :  { %v66_v16 = vrot.slane %v65_v15, 4 }
  0x1c   :  { %v60_v17 = vmax.f32 %v58_v13, %v59_v14 }
  0x1d   :  { %v67_v18 = vmax.f32 %v65_v15, %v66_v16 }
  0x1e   :  { %v61_v19 = vrot.slane %v60_v17, 2 }
  0x1f   :  { %v68_v20 = vrot.slane %v67_v18, 2 }
  0x20   :  { %v62_v21 = vmax.f32 %v60_v17, %v61_v19 }
  0x21   :  { %v69_v22 = vmax.f32 %v67_v18, %v68_v20 }
  0x22   :  { %v63_v23 = vrot.slane %v62_v21, 1 }
  0x23   :  { %v70_v24 = vrot.slane %v69_v22, 1 }
  0x24   :  { %v64_v25 = vmax.f32 %v62_v21, %v63_v23 }
  0x25   :  { %v71_v26 = vmax.f32 %v69_v22, %v70_v24 }
  0x27   :  { %v75_v27 = vsel %vm74_vm2, %v71_v26, %v64_v25 }
  0x28   :  { %78 = vst.msk [vmem:[#allocation6] sm:$0x3] %vm77_vm3, %v75_v27 }
  0x29   :  { %89 = dma.vmem_to_hbm [thread:$0]  %s85_s13, 32, %s87_s16, [#allocation5]  }
  0x2a   :  { %151 = dma.done.wait [#allocation5], 32  }
  0x2b   :  { %152 = vsyncadd [#allocation5], 4294967264 }
  0x2c   :  { %94 = vsyncpa [#allocation4], 1 }
  0x2d   :  { %95 = vsyncpa [#allocation5], 1 }

</bundles_post_ra>
